<compile_context>
chip_gen: v7x
topology: tpu7x:2x2x1
jax: 0.10.0
libtpu: 0.0.40
codegen_flags: <defaults>
</compile_context>

<pallas_src>
import functools

import jax
import jax.numpy as jnp
from jax import lax
from jax.experimental import pallas as pl
from jax.experimental.pallas import tpu as pltpu

LANES = 128
TILE_ROWS = 4096          # 4096 * 128 * 4 B = 2 MiB per f32 input buffer


def _round_up(a, b):
    return ((a + b - 1) // b) * b


def _round_down(a, b):
    return (a // b) * b


def _cdiv(a, b):
    return (a + b - 1) // b


def _sublane_packing(dtype):
    # Native second-minor packing: 8 for 32-bit, 16 for 16-bit, 32 for 8-bit.
    return max(8, 32 // max(1, jnp.dtype(dtype).itemsize))


def _num_tensorcores():
    """Conservative per-device TensorCore count (2 only on multi-TC chips)."""
    try:
        kind = jax.devices()[0].device_kind.lower()
    except Exception:
        return 1
    if "v7" in kind or "tpu7" in kind or "v4" in kind or "v5p" in kind:
        return 2
    return 1


def _wmse_kernel(pred_ref, tgt_ref, out_ref, *, alpha, tile_rows, acc_rows,
                 blocks_per_core, valid_rows):
    c = pl.program_id(0)   # TensorCore / partial-sum index ("parallel")
    i = pl.program_id(1)   # streaming reduction step ("arbitrary")

    @pl.when(i == 0)
    def _init():
        out_ref[...] = jnp.zeros_like(out_ref)

    p = pred_ref[...].astype(jnp.float32)
    t = tgt_ref[...].astype(jnp.float32)
    diff = p - t
    weights = jnp.exp(jnp.abs(t) * jnp.float32(alpha))   # EUP slot, hidden under DMA
    contrib = diff * diff * weights

    folds = tile_rows // acc_rows

    def _accumulate(x):
        # Free re-view: groups of `acc_rows` (multiple of 8) contiguous rows
        # never cross (8, 128) tile boundaries.  The resulting independent add
        # chains across acc_rows*128/1024 output vregs keep the VPU ILP-rich.
        out_ref[...] += jnp.sum(x.reshape(folds, acc_rows, LANES), axis=0)

    gb = c * blocks_per_core + i          # unclamped global block index
    block_start = gb * tile_rows

    # Interior blocks (the common case): completely mask-free accumulate.
    @pl.when(block_start + tile_rows <= valid_rows)
    def _interior():
        _accumulate(contrib)

    # Boundary block: row-mask against a SCALAR limit (no per-element offset
    # add); select discards NaN/Inf produced from the unspecified overhang.
    @pl.when(jnp.logical_and(block_start < valid_rows,
                             block_start + tile_rows > valid_rows))
    def _boundary():
        limit = valid_rows - block_start
        row_ids = lax.broadcasted_iota(jnp.int32, (tile_rows, 1), 0)
        _accumulate(jnp.where(row_ids < limit, contrib, jnp.float32(0.0)))

    # Fully out-of-range (clamped duplicate) blocks contribute nothing.


def weighted_mse(predictions, targets, alpha=0.1):
    """Pallas TPU implementation of WeightedMSE.forward."""
    assert predictions.shape == targets.shape
    n_elems = predictions.size
    sub = max(_sublane_packing(predictions.dtype),
              _sublane_packing(targets.dtype))

    p_flat = predictions.reshape(-1)
    t_flat = targets.reshape(-1)

    if n_elems % LANES == 0 and n_elems // LANES >= sub:
        # Fast path: free row-major reshape, no copy, native dtype.
        rows = n_elems // LANES
    else:
        # Ragged / tiny fallback: pad the flat tail to a full native tile.
        # Zero pads contribute (0 - 0)^2 * exp(0) = 0 to the sum.
        # TODO(synk): for LARGE non-128-aligned inputs this pad rewrites the
        # arrays through HBM; conv_lstm NCHW inputs never hit this path.
        padded = _round_up(n_elems, sub * LANES)
        p_flat = jnp.pad(p_flat, (0, padded - n_elems))
        t_flat = jnp.pad(t_flat, (0, padded - n_elems))
        rows = padded // LANES

    p2d = p_flat.reshape(rows, LANES)
    t2d = t_flat.reshape(rows, LANES)

    tile_rows = min(TILE_ROWS, _round_down(rows, sub))
    blocks_total = _cdiv(rows, tile_rows)
    num_cores = min(_num_tensorcores(), blocks_total)
    blocks_per_core = _cdiv(blocks_total, num_cores)
    grid = (num_cores, blocks_per_core)

    # Tall per-core accumulator: largest power-of-two row count <= 128 that
    # divides the tile (independent add chains + layout-clean reshape).
    acc_rows = 8
    for cand in (128, 64, 32, 16):
        if tile_rows % cand == 0:
            acc_rows = cand
            break

    def in_index_map(c, i):
        # Clamp so the DMA never walks past the slab; clamped duplicate
        # blocks are skipped by the in-kernel `pl.when` gates.
        return (jnp.minimum(c * blocks_per_core + i, blocks_total - 1), 0)

    kernel = functools.partial(
        _wmse_kernel, alpha=float(alpha), tile_rows=tile_rows,
        acc_rows=acc_rows, blocks_per_core=blocks_per_core, valid_rows=rows)

    in_bytes = n_elems * (jnp.dtype(predictions.dtype).itemsize
                          + jnp.dtype(targets.dtype).itemsize)
    out_bytes = num_cores * acc_rows * LANES * 4
    cost = pl.CostEstimate(flops=7 * n_elems, transcendentals=n_elems,
                           bytes_accessed=in_bytes + out_bytes)

    partials = pl.pallas_call(
        kernel,
        out_shape=jax.ShapeDtypeStruct((num_cores * acc_rows, LANES),
                                       jnp.float32),
        grid_spec=pltpu.PrefetchScalarGridSpec(
            num_scalar_prefetch=0,
            grid=grid,
            in_specs=[
                pl.BlockSpec((tile_rows, LANES), in_index_map),
                pl.BlockSpec((tile_rows, LANES), in_index_map),
            ],
            out_specs=pl.BlockSpec((acc_rows, LANES), lambda c, i: (c, 0)),
        ),
        compiler_params=pltpu.CompilerParams(
            dimension_semantics=("parallel", "arbitrary"),
            vmem_limit_bytes=32 * 1024 * 1024,
        ),
        cost_estimate=cost,
    )(p2d, t2d)

    total = jnp.sum(partials, dtype=jnp.float32)
    return (total / jnp.float32(n_elems)).astype(jnp.float32)


def weighted_mse_ref(predictions, targets, alpha=0.1):
    p = predictions.astype(jnp.float32)
    t = targets.astype(jnp.float32)
    squared_error = (p - t) ** 2
    weights = jnp.exp(jnp.abs(t) * alpha)
    return jnp.mean(squared_error * weights)


if __name__ == "__main__":
    key = jax.random.PRNGKey(0)
    k1, k2 = jax.random.split(key)

    # Primary check: small NCHW inputs (same convention as the PyTorch module).
    shape = (2, 4, 16, 16)
    predictions = jax.random.normal(k1, shape, dtype=jnp.float32)
    targets = jax.random.normal(k2, shape, dtype=jnp.float32)
    loss = jax.block_until_ready(weighted_mse(predictions, targets, alpha=0.1))
    ref = weighted_mse_ref(predictions, targets, alpha=0.1)
    assert jnp.allclose(loss, ref, rtol=1e-5, atol=1e-6), (loss, ref)

    # Multi-block streaming path (several reduction steps).
    shape2 = (8, 8, 128, 128)
    p2 = jax.random.normal(k1, shape2, dtype=jnp.float32)
    t2 = jax.random.normal(k2, shape2, dtype=jnp.float32)
    loss2 = jax.block_until_ready(weighted_mse(p2, t2, alpha=0.1))
    ref2 = weighted_mse_ref(p2, t2, alpha=0.1)
    assert jnp.allclose(loss2, ref2, rtol=1e-4, atol=1e-5), (loss2, ref2)

    # Boundary-masked path (rows not a multiple of tile_rows).
    shape_b = (3, 5, 16, 16)     # 3840 elems -> 30 rows, tile_rows=24, 2 blocks
    pb = jax.random.normal(k1, shape_b, dtype=jnp.float32)
    tb = jax.random.normal(k2, shape_b, dtype=jnp.float32)
    loss_b = jax.block_until_ready(weighted_mse(pb, tb, alpha=0.1))
    ref_b = weighted_mse_ref(pb, tb, alpha=0.1)
    assert jnp.allclose(loss_b, ref_b, rtol=1e-5, atol=1e-6), (loss_b, ref_b)

    # Ragged path (flat size not a multiple of 128).
    shape3 = (2, 3, 5, 7)
    p3 = jax.random.normal(k1, shape3, dtype=jnp.float32)
    t3 = jax.random.normal(k2, shape3, dtype=jnp.float32)
    loss3 = jax.block_until_ready(weighted_mse(p3, t3, alpha=0.1))
    ref3 = weighted_mse_ref(p3, t3, alpha=0.1)
    assert jnp.allclose(loss3, ref3, rtol=1e-5, atol=1e-6), (loss3, ref3)

    # Packed-dtype path (bf16, native 16-row sublane packing, in-kernel cast).
    shape4 = (4, 4, 32, 32)
    p4 = jax.random.normal(k1, shape4, dtype=jnp.float32).astype(jnp.bfloat16)
    t4 = jax.random.normal(k2, shape4, dtype=jnp.float32).astype(jnp.bfloat16)
    loss4 = jax.block_until_ready(weighted_mse(p4, t4, alpha=0.1))
    ref4 = weighted_mse_ref(p4, t4, alpha=0.1)
    assert jnp.allclose(loss4, ref4, rtol=1e-5, atol=1e-6), (loss4, ref4)

    print("KERNEL_OK")
</pallas_src>

<mosaic_0001>
module attributes {stable_mosaic.version = 11 : i64} {
  func.func @_wmse_kernel(%arg0: i32, %arg1: i32, %arg2: memref<16x128xf32, #tpu.memory_space<vmem>>, %arg3: memref<16x128xf32, #tpu.memory_space<vmem>>, %arg4: memref<16x128xf32, #tpu.memory_space<vmem>>) attributes {dimension_semantics = [#tpu.dimension_semantics<parallel>, #tpu.dimension_semantics<arbitrary>], iteration_bounds = array<i64: 1, 1>, scalar_prefetch = 0 : i64, scratch_operands = 0 : i64, tpu.core_type = #tpu.core_type<tc>, window_params = [{transform_indices = @transform_0, window_bounds = array<i64: 16, 128>}, {transform_indices = @transform_1, window_bounds = array<i64: 16, 128>}, {transform_indices = @transform_2, window_bounds = array<i64: 16, 128>}]} {
    %c0_i32 = arith.constant 0 : i32
    %0 = arith.cmpi eq, %arg1, %c0_i32 : i32
    %1 = arith.extui %0 : i1 to i32
    %c0_i32_0 = arith.constant 0 : i32
    %2 = arith.cmpi ne, %1, %c0_i32_0 : i32
    scf.if %2 {
      %cst_11 = arith.constant 0.000000e+00 : f32
      %25 = vector.broadcast %cst_11 : f32 to vector<16x128xf32>
      %c0_12 = arith.constant 0 : index
      %c0_13 = arith.constant 0 : index
      %26 = vector.load %arg4[%c0_12, %c0_13] : memref<16x128xf32, #tpu.memory_space<vmem>>, vector<16x128xf32>
      tpu.vector_store %arg4[%c0_12, %c0_13], %25 {strides = array<i32>} : memref<16x128xf32, #tpu.memory_space<vmem>>, vector<16x128xf32>,
    } else {
    }
    %c0 = arith.constant 0 : index
    %c0_1 = arith.constant 0 : index
    %3 = vector.load %arg2[%c0, %c0_1] : memref<16x128xf32, #tpu.memory_space<vmem>>, vector<16x128xf32>
    %c0_2 = arith.constant 0 : index
    %c0_3 = arith.constant 0 : index
    %4 = vector.load %arg3[%c0_2, %c0_3] : memref<16x128xf32, #tpu.memory_space<vmem>>, vector<16x128xf32>
    %5 = arith.subf %3, %4 : vector<16x128xf32>
    %6 = math.absf %4 : vector<16x128xf32>
    %cst = arith.constant 1.000000e-01 : f32
    %7 = vector.broadcast %cst : f32 to vector<16x128xf32>
    %8 = arith.mulf %6, %7 : vector<16x128xf32>
    %9 = math.exp %8 : vector<16x128xf32>
    %10 = arith.mulf %5, %5 : vector<16x128xf32>
    %11 = arith.mulf %10, %9 : vector<16x128xf32>
    %c1_i32 = arith.constant 1 : i32
    %12 = arith.muli %arg0, %c1_i32 : i32
    %13 = arith.addi %12, %arg1 : i32
    %c16_i32 = arith.constant 16 : i32
    %14 = arith.muli %13, %c16_i32 : i32
    %c16_i32_4 = arith.constant 16 : i32
    %15 = arith.addi %14, %c16_i32_4 : i32
    %c16_i32_5 = arith.constant 16 : i32
    %16 = arith.cmpi sle, %15, %c16_i32_5 : i32
    %17 = arith.extui %16 : i1 to i32
    %c0_i32_6 = arith.constant 0 : i32
    %18 = arith.cmpi ne, %17, %c0_i32_6 : i32
    scf.if %18 {
      %c0_11 = arith.constant 0 : index
      %c0_12 = arith.constant 0 : index
      %25 = vector.load %arg4[%c0_11, %c0_12] : memref<16x128xf32, #tpu.memory_space<vmem>>, vector<16x128xf32>
      %26 = vector.shape_cast %11 : vector<16x128xf32> to vector<1x16x128xf32>
      %cst_13 = arith.constant dense<0.000000e+00> : vector<16x128xf32>
      %27 = vector.multi_reduction <add>, %26, %cst_13 [0] : vector<1x16x128xf32> to vector<16x128xf32>
      %28 = arith.addf %25, %27 : vector<16x128xf32>
      %c0_14 = arith.constant 0 : index
      %c0_15 = arith.constant 0 : index
      %29 = vector.load %arg4[%c0_14, %c0_15] : memref<16x128xf32, #tpu.memory_space<vmem>>, vector<16x128xf32>
      tpu.vector_store %arg4[%c0_14, %c0_15], %28 {strides = array<i32>} : memref<16x128xf32, #tpu.memory_space<vmem>>, vector<16x128xf32>,
    } else {
    }
    %c16_i32_7 = arith.constant 16 : i32
    %19 = arith.cmpi slt, %14, %c16_i32_7 : i32
    %c16_i32_8 = arith.constant 16 : i32
    %20 = arith.addi %14, %c16_i32_8 : i32
    %c16_i32_9 = arith.constant 16 : i32
    %21 = arith.cmpi sgt, %20, %c16_i32_9 : i32
    %22 = arith.andi %19, %21 : i1
    %23 = arith.extui %22 : i1 to i32
    %c0_i32_10 = arith.constant 0 : i32
    %24 = arith.cmpi ne, %23, %c0_i32_10 : i32
    scf.if %24 {
      %c16_i32_11 = arith.constant 16 : i32
      %25 = arith.subi %c16_i32_11, %14 : i32
      %26 = tpu.iota {dimensions = array<i32: 0>} : vector<16x1xi32>
      %27 = vector.broadcast %25 : i32 to vector<16x1xi32>
      %28 = arith.cmpi slt, %26, %27 : vector<16x1xi32>
      %cst_12 = arith.constant 0.000000e+00 : f32
      %29 = vector.shape_cast %28 : vector<16x1xi1> to vector<16x1xi1>
      %30 = vector.broadcast %29 : vector<16x1xi1> to vector<16x128xi1>
      %31 = vector.broadcast %cst_12 : f32 to vector<16x128xf32>
      %32 = arith.select %30, %11, %31 : vector<16x128xi1>, vector<16x128xf32>
      %c0_13 = arith.constant 0 : index
      %c0_14 = arith.constant 0 : index
      %33 = vector.load %arg4[%c0_13, %c0_14] : memref<16x128xf32, #tpu.memory_space<vmem>>, vector<16x128xf32>
      %34 = vector.shape_cast %32 : vector<16x128xf32> to vector<1x16x128xf32>
      %cst_15 = arith.constant dense<0.000000e+00> : vector<16x128xf32>
      %35 = vector.multi_reduction <add>, %34, %cst_15 [0] : vector<1x16x128xf32> to vector<16x128xf32>
      %36 = arith.addf %33, %35 : vector<16x128xf32>
      %c0_16 = arith.constant 0 : index
      %c0_17 = arith.constant 0 : index
      %37 = vector.load %arg4[%c0_16, %c0_17] : memref<16x128xf32, #tpu.memory_space<vmem>>, vector<16x128xf32>
      tpu.vector_store %arg4[%c0_16, %c0_17], %36 {strides = array<i32>} : memref<16x128xf32, #tpu.memory_space<vmem>>, vector<16x128xf32>,
    } else {
    }
    return
  }
  func.func @transform_0(%arg0: i32, %arg1: i32) -> (i32, i32) {
    %c1_i32 = arith.constant 1 : i32
    %0 = arith.muli %arg0, %c1_i32 : i32
    %1 = arith.addi %0, %arg1 : i32
    %c0_i32 = arith.constant 0 : i32
    %2 = arith.minsi %1, %c0_i32 : i32
    %c0_i32_0 = arith.constant 0 : i32
    %c0_i32_1 = arith.constant 0 : i32
    return %2, %c0_i32_0 : i32, i32
  }
  func.func @transform_1(%arg0: i32, %arg1: i32) -> (i32, i32) {
    %c1_i32 = arith.constant 1 : i32
    %0 = arith.muli %arg0, %c1_i32 : i32
    %1 = arith.addi %0, %arg1 : i32
    %c0_i32 = arith.constant 0 : i32
    %2 = arith.minsi %1, %c0_i32 : i32
    %c0_i32_0 = arith.constant 0 : i32
    %c0_i32_1 = arith.constant 0 : i32
    return %2, %c0_i32_0 : i32, i32
  }
  func.func @transform_2(%arg0: i32, %arg1: i32) -> (i32, i32) {
    %c0_i32 = arith.constant 0 : i32
    %c0_i32_0 = arith.constant 0 : i32
    return %arg0, %c0_i32 : i32, i32
  }
}

</mosaic_0001>

<bundles_post_ra>
// kernel: tpu_custom_call.1
= control target key start
LH: loop header
LB: loop body
LE: loop exit
PB: predicated region body
PF: predicated region fallthrough
CT: control target
= control target key end

     0   :  { %7 = vsyncpa [#allocation3], 0  ;;  %s295_s0 = inlined_call_operand.hbm [shape: f32[16,128], index: 0, kind: input, shape index: {}]   ;;  %s296_s1 = inlined_call_operand.hbm [shape: f32[16,128], index: 1, kind: input, shape index: {}]   ;;  %s297_s2 = inlined_call_operand.hbm [shape: f32[16,128], index: 2, kind: output, shape index: {}]  }
   0x1   :  { %8 = vsyncpa [#allocation6], 0 }
   0x2   :  { %9 = vsyncpa [#allocation4], 0  ;;  %s230_s9 = smov [#allocation2]   ;;  %s158_s13 = scalar_lea.hbm %s295_s0, 256 }
   0x3   :  { %s21_s10 = sshll.u32 %s230_s9, 4  ;;  %p159_p0 = scmp.ne.s32.totalorder %s295_s0, %s158_s13  ;;  %s22_s10 = int_to_ptr.vmem [resolvable:$true] %s21_s10 }
   0x4   :  { %p162_p1 = scmp.lt.u32.totalorder %s158_s13, %s295_s0 }
   0x6   :  { %p164_p2 = pnand %p162_p1, %p159_p0 }
   0x8   :  { %167 = shalt.err (!%p164_p2)
}
   0x9   :  { %s168_s18 = scalar_lea.vmem %s22_s10, 256  ;;  %p173_p4 = scmp.lt.s32.totalorder %s22_s10, %s22_s10 }
   0xa   :  { %p169_p3 = scmp.ne.s32.totalorder %s22_s10, %s168_s18  ;;  %p174_p5 = scmp.lt.s32.totalorder %s168_s18, %s168_s18 }
   0xc   :  { %p175_p6 = por %p174_p5, %p173_p4 }
   0xe   :  { %p176_p7 = pnand %p175_p6, %p169_p3 }
  0x10   :  { %179 = shalt.err (!%p176_p7)
}
  0x11   :  { %s231_s19 = smov 128   ;;  %s232_s20 = smov 8  }
  0x12   :  { %27 = dma.hbm_to_vmem [thread:$0]  %s295_s0, 256, %s22_s10, [#allocation3], %s231_s19, %s231_s19, %s232_s20  }
  0x13   :  { %s233_s23 = smov [#allocation5]   ;;  %s180_s27 = scalar_lea.hbm %s296_s1, 256 }
  0x14   :  { %s39_s24 = sshll.u32 %s233_s23, 4  ;;  %p181_p8 = scmp.ne.s32.totalorder %s296_s1, %s180_s27  ;;  %s40_s24 = int_to_ptr.vmem [resolvable:$true] %s39_s24 }
  0x15   :  { %p184_p9 = scmp.lt.u32.totalorder %s180_s27, %s296_s1 }
  0x17   :  { %p186_p10 = pnand %p184_p9, %p181_p8 }
  0x19   :  { %189 = shalt.err (!%p186_p10)
}
  0x1a   :  { %s190_s4 = scalar_lea.vmem %s40_s24, 256  ;;  %p195_p12 = scmp.lt.s32.totalorder %s40_s24, %s40_s24 }
  0x1b   :  { %p191_p11 = scmp.ne.s32.totalorder %s40_s24, %s190_s4  ;;  %p196_p13 = scmp.lt.s32.totalorder %s190_s4, %s190_s4 }
  0x1d   :  { %p197_p0 = por %p196_p13, %p195_p12 }
  0x1f   :  { %p198_p1 = pnand %p197_p0, %p191_p11 }
  0x21   :  { %201 = shalt.err (!%p198_p1)
}
  0x22   :  { %45 = dma.hbm_to_vmem [thread:$0]  %s296_s1, 256, %s40_s24, [#allocation6], %s231_s19, %s231_s19, %s232_s20  }
  0x23   :  { %224 = dma.done.wait [#allocation3], 256  }
  0x24   :  { %225 = vsyncadd [#allocation3], 4294967040 }
  0x25   :  { %226 = dma.done.wait [#allocation6], 256  }
  0x26   :  { %227 = vsyncadd [#allocation6], 4294967040  ;;  %v68_v0 = vld [vmem:[#allocation5] sm:$0xff]  ;;  %v69_v2 = vld [vmem:[#allocation5 + $0x8] sm:$0xff]  ;;  %s234_s1 = smov [#allocation7]  }
  0x27   :  { %v72_v1 = vand.u32 2147483647, %v68_v0  ;;  %v73_v3 = vand.u32 2147483647, %v69_v2  ;;  %v66_v8 = vld [vmem:[#allocation2] sm:$0xff]  ;;  %v67_v9 = vld [vmem:[#allocation2 + $0x8] sm:$0xff] }
  0x28   :  { %v70_v10 = vsub.f32 %v66_v8, %v68_v0  ;;  %v71_v11 = vsub.f32 %v67_v9, %v69_v2  ;;  %s131_s6 = sshll.u32 %s234_s1, 4  ;;  %s132_s6 = int_to_ptr.vmem [resolvable:$true] %s131_s6 }
  0x29   :  { %v74_v4 = vmul.f32 0.1, %v72_v1  ;;  %v75_v5 = vmul.f32 0.1, %v73_v3  ;;  %s202_s7 = scalar_lea.vmem %s132_s6, 256  ;;  %p207_p3 = scmp.lt.s32.totalorder %s132_s6, %s132_s6 }
  0x2a   :  { %v80_v12 = vmul.f32 %v70_v10, %v70_v10  ;;  %v81_v13 = vmul.f32 %v71_v11, %v71_v11  ;;  %p203_p2 = scmp.ne.s32.totalorder %s132_s6, %s202_s7  ;;  %p208_p4 = scmp.lt.s32.totalorder %s202_s7, %s202_s7 }
  0x2b   :  { %v76_v6 = vmul.f32 1.442695, %v74_v4  ;;  %v78_v7 = vmul.f32 1.442695, %v75_v5 }
  0x2c   :  { %p209_p5 = por %p208_p4, %p207_p3 }
  0x2d   :  { %154 = vpow2.f32 %v76_v6 }
  0x2e   :  { %156 = vpow2.f32 %v78_v7  ;;  %p210_p6 = pnand %p209_p5, %p203_p2 }
  0x37   :  { %v155_v14 = vpop.eup %154 }
  0x38   :  { %v157_v15 = vpop.eup %156  ;;  %v82_v16 = vmul.f32 %v155_v14, %v80_v12 }
  0x39   :  { %v83_v17 = vmul.f32 %v157_v15, %v81_v13 }
  0x3a   :  { %97 = vst [vmem:[#allocation7] sm:$0xff] %v82_v16 }
  0x3b   :  { %98 = vst [vmem:[#allocation7 + $0x8] sm:$0xff] %v83_v17 }
  0x3c   :  { %213 = shalt.err (!%p210_p6)
}
  0x3d   :  { %s214_s10 = scalar_lea.hbm %s297_s2, 256 }
  0x3e   :  { %p215_p7 = scmp.ne.s32.totalorder %s297_s2, %s214_s10  ;;  %p218_p8 = scmp.lt.u32.totalorder %s214_s10, %s297_s2 }
  0x40   :  { %p220_p9 = pnand %p218_p8, %p215_p7 }
  0x42   :  { %223 = shalt.err (!%p220_p9)
}
  0x43   :  { %137 = dma.vmem_to_hbm [thread:$0]  %s132_s6, 256, %s297_s2, [#allocation4], %s231_s19, %s231_s19, %s232_s20  }
  0x44   :  { %228 = dma.done.wait [#allocation4], 256  }
  0x45   :  { %229 = vsyncadd [#allocation4], 4294967040 }
  0x46   :  { %141 = vsyncpa [#allocation3], 1 }
  0x47   :  { %142 = vsyncpa [#allocation6], 1 }
  0x48   :  { %143 = vsyncpa [#allocation4], 1 }

</bundles_post_ra>
